<compile_context>
chip_gen: v6e
topology: v6e:2x2x1
jax: 0.10.0
libtpu: 0.0.40
codegen_flags: <defaults>
</compile_context>

<pallas_src>
import jax
import jax.numpy as jnp
from jax.experimental import pallas as pl
from jax.experimental.pallas import tpu as pltpu


def _round_up(x, m):
    return (x + m - 1) // m * m


def mlp_kernel(x_ref, w1_ref, b1_ref, w2_ref, b2_ref, o_ref):
    # fc1: cast the f32 activations to bf16 in-register (MXU-native inputs,
    # avoids a wrapper-side HBM cast pass), accumulate in f32 on the MXU.
    x_bf = x_ref[...].astype(jnp.bfloat16)                                   # (Bt, 12)
    h = jnp.dot(x_bf, w1_ref[...], preferred_element_type=jnp.float32)       # (Bt, 128)
    # Bias + ReLU in f32 on the VPU.
    h = jnp.maximum(h + b1_ref[...], 0.0)
    # fc2 (out_features == 1): VPU multiply + XLU lane reduction in exact f32.
    # An N=1 MXU matvec would waste 255/256 result columns for no gain.
    o = jnp.sum(h * w2_ref[...], axis=-1, keepdims=True)                     # (Bt, 1)
    # b2 is a (1,1) block; broadcast-add along sublanes.
    o_ref[...] = o + b2_ref[...]


def net_forward(x, w1, b1, w2, b2, *, block_b=8192):
    """Forward of Net: Linear(12,128) -> ReLU -> Linear(128,1).

    x: (B,12) f32; w1: (128,12); b1: (128,); w2: (1,128); b2: (1,). Returns (B,1) f32.
    """
    B, in_f = x.shape
    hid = w1.shape[0]

    # Batch tile: multiple of 8 (f32 sublane), large enough to amortize the
    # ~0.35us per-grid-step overhead.  At 8192 rows the (Bt,128) f32 hidden
    # intermediate is 4 MiB and the pipelined x/out blocks are <1 MiB:
    # comfortably inside scoped VMEM on v5e/v6e/v7x.
    tile = min(block_b, _round_up(B, 8))
    Bp = _round_up(B, tile)
    if Bp != B:
        x = jnp.pad(x, ((0, Bp - B), (0, 0)))     # ragged last tile: zero-pad + slice after
    grid = (Bp // tile,)

    # Tiny parameter tensors get laid out once in the wrapper (negligible cost);
    # they stay VMEM-resident across all grid steps (constant index_map).
    w1_t = w1.T.astype(jnp.bfloat16)                # (12, 128)
    b1_r = b1.reshape(1, hid).astype(jnp.float32)   # (1, 128)
    w2_r = w2.reshape(1, hid).astype(jnp.float32)   # (1, 128)
    b2_r = b2.reshape(1, 1).astype(jnp.float32)     # (1, 1)

    out = pl.pallas_call(
        mlp_kernel,
        out_shape=jax.ShapeDtypeStruct((Bp, 1), jnp.float32),
        grid=grid,
        in_specs=[
            pl.BlockSpec((tile, in_f), lambda i: (i, 0)),   # x: batch-tiled, auto-pipelined
            pl.BlockSpec((in_f, hid), lambda i: (0, 0)),    # W1^T: resident
            pl.BlockSpec((1, hid), lambda i: (0, 0)),       # b1:   resident
            pl.BlockSpec((1, hid), lambda i: (0, 0)),       # w2:   resident
            pl.BlockSpec((1, 1), lambda i: (0, 0)),         # b2:   resident (1,1) block
        ],
        out_specs=pl.BlockSpec((tile, 1), lambda i: (i, 0)),
        compiler_params=pltpu.CompilerParams(
            # Batch tiles are independent: shard the grid across v7x's two
            # TensorCores (harmless on single-TC v5e/v6e).
            dimension_semantics=("parallel",),
        ),
    )(x, w1_t, b1_r, w2_r, b2_r)

    return out[:B]


def init_params(key):
    """Deterministic init mimicking PyTorch nn.Linear default (uniform +/- 1/sqrt(fan_in))."""
    k1, k2, k3, k4 = jax.random.split(key, 4)
    bound1 = 1.0 / jnp.sqrt(12.0)
    w1 = jax.random.uniform(k1, (128, 12), jnp.float32, -bound1, bound1)   # (out, in)
    b1 = jax.random.uniform(k2, (128,), jnp.float32, -bound1, bound1)
    bound2 = 1.0 / jnp.sqrt(128.0)
    w2 = jax.random.uniform(k3, (1, 128), jnp.float32, -bound2, bound2)    # (out, in)
    b2 = jax.random.uniform(k4, (1,), jnp.float32, -bound2, bound2)
    return w1, b1, w2, b2


def _reference_bf16_operands(x, w1, b1, w2, b2):
    """Same operand rounding as the kernel (x, w1 in bf16; everything else f32)."""
    xb = x.astype(jnp.bfloat16).astype(jnp.float32)
    w1b = w1.astype(jnp.bfloat16).astype(jnp.float32)
    h = jnp.maximum(xb @ w1b.T + b1, 0.0)
    # fc2 as elementwise mul + sum so the reference is exact f32 (independent of
    # XLA's default matmul precision on TPU).
    return (h * w2).sum(axis=-1, keepdims=True) + b2


def _reference_f32(x, w1, b1, w2, b2):
    h = jnp.maximum(x @ w1.T + b1, 0.0)
    return (h * w2).sum(axis=-1, keepdims=True) + b2


if __name__ == "__main__":
    key = jax.random.PRNGKey(0)
    kx, kp, kx2 = jax.random.split(key, 3)
    w1, b1, w2, b2 = init_params(kp)

    # Small shape consistent with the module: batch=8, in_features=12.
    B = 8
    x = jax.random.normal(kx, (B, 12), jnp.float32)
    out = net_forward(x, w1, b1, w2, b2)
    jax.block_until_ready(out)
    assert out.shape == (B, 1)

    ref_bf = _reference_bf16_operands(x, w1, b1, w2, b2)
    assert jnp.allclose(out, ref_bf, atol=1e-3, rtol=1e-3)
    ref_f32 = _reference_f32(x, w1, b1, w2, b2)
    assert jnp.allclose(out, ref_f32, atol=5e-2, rtol=5e-2)

    # Exercise the multi-tile + ragged-batch (padding) path with a small tile.
    B2 = 50
    x2 = jax.random.normal(kx2, (B2, 12), jnp.float32)
    out2 = net_forward(x2, w1, b1, w2, b2, block_b=16)
    jax.block_until_ready(out2)
    assert out2.shape == (B2, 1)
    ref2 = _reference_bf16_operands(x2, w1, b1, w2, b2)
    assert jnp.allclose(out2, ref2, atol=1e-3, rtol=1e-3)

    print("KERNEL_OK")
</pallas_src>

<mosaic_0001>
module attributes {stable_mosaic.version = 11 : i64} {
  func.func @mlp_kernel(%arg0: i32, %arg1: memref<8x12xf32, #tpu.memory_space<vmem>>, %arg2: memref<12x128xbf16, #tpu.memory_space<vmem>>, %arg3: memref<1x128xf32, #tpu.memory_space<vmem>>, %arg4: memref<1x128xf32, #tpu.memory_space<vmem>>, %arg5: memref<1x1xf32, #tpu.memory_space<vmem>>, %arg6: memref<8x1xf32, #tpu.memory_space<vmem>>) attributes {dimension_semantics = [#tpu.dimension_semantics<parallel>], iteration_bounds = array<i64: 1>, scalar_prefetch = 0 : i64, scratch_operands = 0 : i64, tpu.core_type = #tpu.core_type<tc>, window_params = [{transform_indices = @transform_0, window_bounds = array<i64: 8, 12>}, {pipeline_mode = #tpu.pipeline_mode<synchronous>, transform_indices = @transform_1, window_bounds = array<i64: 12, 128>}, {pipeline_mode = #tpu.pipeline_mode<synchronous>, transform_indices = @transform_2, window_bounds = array<i64: 1, 128>}, {pipeline_mode = #tpu.pipeline_mode<synchronous>, transform_indices = @transform_3, window_bounds = array<i64: 1, 128>}, {pipeline_mode = #tpu.pipeline_mode<synchronous>, transform_indices = @transform_4, window_bounds = array<i64: 1, 1>}, {transform_indices = @transform_5, window_bounds = array<i64: 8, 1>}]} {
    %c0 = arith.constant 0 : index
    %c0_0 = arith.constant 0 : index
    %0 = vector.load %arg1[%c0, %c0_0] : memref<8x12xf32, #tpu.memory_space<vmem>>, vector<8x12xf32>
    %1 = arith.truncf %0 : vector<8x12xf32> to vector<8x12xbf16>
    %c0_1 = arith.constant 0 : index
    %c0_2 = arith.constant 0 : index
    %2 = vector.load %arg2[%c0_1, %c0_2] : memref<12x128xbf16, #tpu.memory_space<vmem>>, vector<12x128xbf16>
    %cst = arith.constant dense<0.000000e+00> : vector<8x128xf32>
    %3 = tpu.matmul %1, %2, %cst {dimension_numbers = #tpu.dot_dimension_numbers<[1], [0], [0], [1], [0, 0, 1, 1], [], []>} : vector<8x12xbf16>, vector<12x128xbf16>, vector<8x128xf32> -> vector<8x128xf32>
    %c0_3 = arith.constant 0 : index
    %c0_4 = arith.constant 0 : index
    %4 = vector.load %arg3[%c0_3, %c0_4] : memref<1x128xf32, #tpu.memory_space<vmem>>, vector<1x128xf32>
    %5 = vector.broadcast %4 : vector<1x128xf32> to vector<8x128xf32>
    %6 = arith.addf %3, %5 : vector<8x128xf32>
    %cst_5 = arith.constant 0.000000e+00 : f32
    %7 = vector.broadcast %cst_5 : f32 to vector<8x128xf32>
    %8 = arith.maximumf %6, %7 : vector<8x128xf32>
    %c0_6 = arith.constant 0 : index
    %c0_7 = arith.constant 0 : index
    %9 = vector.load %arg4[%c0_6, %c0_7] : memref<1x128xf32, #tpu.memory_space<vmem>>, vector<1x128xf32>
    %10 = vector.broadcast %9 : vector<1x128xf32> to vector<8x128xf32>
    %11 = arith.mulf %8, %10 : vector<8x128xf32>
    %cst_8 = arith.constant dense<0.000000e+00> : vector<8xf32>
    %12 = vector.multi_reduction <add>, %11, %cst_8 [1] : vector<8x128xf32> to vector<8xf32>
    %13 = vector.shape_cast %12 : vector<8xf32> to vector<8x1xf32>
    %c0_9 = arith.constant 0 : index
    %c0_10 = arith.constant 0 : index
    %14 = vector.load %arg5[%c0_9, %c0_10] : memref<1x1xf32, #tpu.memory_space<vmem>>, vector<1x1xf32>
    %15 = vector.broadcast %14 : vector<1x1xf32> to vector<8x1xf32>
    %16 = arith.addf %13, %15 : vector<8x1xf32>
    %c0_11 = arith.constant 0 : index
    %c0_12 = arith.constant 0 : index
    %17 = vector.load %arg6[%c0_11, %c0_12] : memref<8x1xf32, #tpu.memory_space<vmem>>, vector<8x1xf32>
    tpu.vector_store %arg6[%c0_11, %c0_12], %16 {strides = array<i32>} : memref<8x1xf32, #tpu.memory_space<vmem>>, vector<8x1xf32>,
    return
  }
  func.func @transform_0(%arg0: i32) -> (i32, i32) {
    %c0_i32 = arith.constant 0 : i32
    %c0_i32_0 = arith.constant 0 : i32
    return %arg0, %c0_i32 : i32, i32
  }
  func.func @transform_1(%arg0: i32) -> (i32, i32) {
    %c0_i32 = arith.constant 0 : i32
    %c0_i32_0 = arith.constant 0 : i32
    %c0_i32_1 = arith.constant 0 : i32
    return %c0_i32, %c0_i32_0 : i32, i32
  }
  func.func @transform_2(%arg0: i32) -> (i32, i32) {
    %c0_i32 = arith.constant 0 : i32
    %c0_i32_0 = arith.constant 0 : i32
    %c0_i32_1 = arith.constant 0 : i32
    return %c0_i32, %c0_i32_0 : i32, i32
  }
  func.func @transform_3(%arg0: i32) -> (i32, i32) {
    %c0_i32 = arith.constant 0 : i32
    %c0_i32_0 = arith.constant 0 : i32
    %c0_i32_1 = arith.constant 0 : i32
    return %c0_i32, %c0_i32_0 : i32, i32
  }
  func.func @transform_4(%arg0: i32) -> (i32, i32) {
    %c0_i32 = arith.constant 0 : i32
    %c0_i32_0 = arith.constant 0 : i32
    %c0_i32_1 = arith.constant 0 : i32
    return %c0_i32, %c0_i32_0 : i32, i32
  }
  func.func @transform_5(%arg0: i32) -> (i32, i32) {
    %c0_i32 = arith.constant 0 : i32
    %c0_i32_0 = arith.constant 0 : i32
    return %arg0, %c0_i32 : i32, i32
  }
}

</mosaic_0001>

<bundles_post_ra>
// kernel: tpu_custom_call.1
= control target key start
LH: loop header
LB: loop body
LE: loop exit
PB: predicated region body
PF: predicated region fallthrough
CT: control target
= control target key end

     0   :  { %s258_s0 = inlined_call_operand.hbm [shape: f32[8,12], index: 0, kind: input, shape index: {}]   ;;  %s259_s1 = inlined_call_operand.hbm [shape: bf16[12,128], index: 1, kind: input, shape index: {}]   ;;  %s260_s2 = inlined_call_operand.vmem [shape: f32[1,128], index: 2, kind: input, shape index: {}]   ;;  %s261_s3 = inlined_call_operand.vmem [shape: f32[1,128], index: 3, kind: input, shape index: {}]   ;;  %s262_s4 = inlined_call_operand.<no memory space> [shape: f32[1,1], index: 4, kind: input, shape index: {}]   ;;  %s263_s5 = inlined_call_operand.vmem [shape: f32[8,1], index: 5, kind: output, shape index: {}]  }
   0x1   :  { %v10_v0 = vstv %s262_s4 }
   0x2   :  { %11 = vst [vmem:[#allocation2] sm:$0x1] %v10_v0 }
   0x3   :  { %12 = vsyncpa [#allocation4], 0 }
   0x4   :  { %13 = vsyncpa [#allocation6], 0  ;;  %s204_s20 = smov [#allocation3]   ;;  %s205_s22 = smov [#allocation5]  }
   0x5   :  { %s20_s21 = sshll.u32 %s204_s20, 4  ;;  %s29_s23 = sshll.u32 %s205_s22, 4  ;;  %s21_s21 = int_to_ptr.vmem [resolvable:$true] %s20_s21  ;;  %s30_s23 = int_to_ptr.vmem [resolvable:$true] %s29_s23 }
   0x6   :  { %s168_s24 = scalar_lea.vmem %s21_s21, 128  ;;  %p173_p1 = scmp.lt.s32.totalorder %s21_s21, %s21_s21 }
   0x7   :  { %p169_p0 = scmp.ne.s32.totalorder %s21_s21, %s168_s24  ;;  %p174_p2 = scmp.lt.s32.totalorder %s168_s24, %s168_s24 }
   0x9   :  { %p175_p3 = por %p174_p2, %p173_p1 }
   0xb   :  { %p176_p4 = pnand %p175_p3, %p169_p0 }
   0xd   :  { %179 = shalt.err (!%p176_p4)
}
   0xe   :  { %23 = dma.hbm_to_vmem [thread:$0]  %s258_s0, 128, %s21_s21, [#allocation4]  }
   0xf   :  { %s188_s4 = scalar_lea.vmem %s30_s23, 128  ;;  %p193_p6 = scmp.lt.s32.totalorder %s30_s23, %s30_s23 }
  0x10   :  { %p189_p5 = scmp.ne.s32.totalorder %s30_s23, %s188_s4  ;;  %p194_p7 = scmp.lt.s32.totalorder %s188_s4, %s188_s4 }
  0x12   :  { %p195_p8 = por %p194_p7, %p193_p6 }
  0x14   :  { %p196_p9 = pnand %p195_p8, %p189_p5 }
  0x16   :  { %199 = shalt.err (!%p196_p9)
}
  0x17   :  { %s206_s27 = smov 64   ;;  %s207_s28 = smov 4  }
  0x18   :  { %35 = dma.hbm_to_vmem [thread:$0]  %s259_s1, 128, %s30_s23, [#allocation6], %s206_s27, %s206_s27, %s207_s28  }
  0x19   :  { %200 = dma.done.wait [#allocation4], 128  }
  0x1a   :  { %201 = vsyncadd [#allocation4], 4294967168 }
  0x1b   :  { %202 = dma.done.wait [#allocation6], 128  }
  0x1c   :  { %203 = vsyncadd [#allocation6], 4294967168  ;;  %v208_v1 = vmov 0.0   ;;  %vm209_vm0 = vmmov 0   ;;  %vm69_vm1 = vcmask 1045504   ;;  %v49_v3 = vld [vmem:[#allocation3] sm:$0xff] }
  0x1d   :  { %147 = vmatprep.subr.bf16.mxu0 %v208_v1  ;;  %149 = vmatprep.mubr.msk.bf16.mxu0 %vm209_vm0, %v208_v1  ;;  %v159_v2 = vld [vmem:[#allocation5] sm:$0x3f]   ;;  %v50_v5 = vpack.c.bf16 %v49_v3, %v49_v3  ;;  %vm65_vm2 = vcmask 97280   ;;  %v140_v6 = vld [vmem:[%s260_s2] ss:$0 sm:$0xff]  ;;  %vm132_vm3 = vcmask 7168  }
  0x1e   :  { %v71_v4 = vsel %vm69_vm1, %v159_v2, 0  ;;  %v143_v10 = vld [vmem:[%s261_s3] ss:$0 sm:$0xff] }
  0x1f   :  { %148 = vmatpush3.bf16.msra.mxu0 %v71_v4  ;;  %v144_v15 = vld [vmem:[#allocation2] ss:$0 sm:$0xff] }
  0x22   :  { %150 = vmatmul.mubr.msk.bf16.vlgmr.msra.gmra.mxu0 %vm65_vm2, %v50_v5 }
  0xe2   :  { %v107_v7 = vpop.f32.mrf.mxu0 }
  0xe3   :  { %v108_v8 = vadd.f32 %v140_v6, %v107_v7 }
  0xe4   :  { %v151_v9 = vpop.f32.mrf.mxu0 }
  0xe5   :  { %v113_v11 = vmax.f32 %v108_v8, 0.0 }
  0xe6   :  { %v110_v12 = vpop.f32.mrf.mxu0 }
  0xe7   :  { %v121_v13 = vmul.f32 %v143_v10, %v113_v11 }
  0xe8   :  { %v152_v14 = vpop.f32.mrf.mxu0 }
  0xe9   :  { %122 = vadd.xlane.f32.xlu0 %v121_v13 }
 0x172   :  { %v123_v16 = vpop.xlane.xlu0 %122 }
 0x173   :  { %v131_v17 = vadd.f32 %v144_v15, %v123_v16 }
 0x175   :  { %133 = vst.msk [vmem:[%s263_s5] sm:$0xff] %vm132_vm3, %v131_v17 }
 0x176   :  { %138 = vsyncpa [#allocation4], 1 }
 0x177   :  { %139 = vsyncpa [#allocation6], 1 }

</bundles_post_ra>
